<compile_context>
chip_gen: v7x
topology: tpu7x:2x2x1
jax: 0.10.0
libtpu: 0.0.40
codegen_flags: <defaults>
</compile_context>

<pallas_src>
import functools

import jax
import jax.numpy as jnp
from jax.experimental import pallas as pl
from jax.experimental.pallas import tpu as pltpu


def _round_up(n, m):
    return ((n + m - 1) // m) * m


def _mlp_kernel(x_ref, w1_ref, w2_ref, w3_ref, b_ref, o_ref, *, hb, ht):
    """Fused 3-layer MLP on one batch tile.  hb/ht are padded hidden widths."""
    # x arrives as f32; cast to the MXU compute dtype in VMEM instead of
    # materializing a padded bf16 copy in HBM.
    x = x_ref[...].astype(w1_ref.dtype)
    # fc1 + ReLU   (dropout = identity in eval mode)
    h1 = jnp.dot(x, w1_ref[...], preferred_element_type=jnp.float32)
    h1 = jnp.maximum(h1 + b_ref[:, 0:hb], 0.0)
    # fc_extra + ReLU
    h2 = jnp.dot(h1.astype(w2_ref.dtype), w2_ref[...],
                 preferred_element_type=jnp.float32)
    h2 = jnp.maximum(h2 + b_ref[:, hb:hb + ht], 0.0)
    # fc2 (no activation)
    out = jnp.dot(h2.astype(w3_ref.dtype), w3_ref[...],
                  preferred_element_type=jnp.float32)
    o_ref[...] = (out + b_ref[:, hb + ht:]).astype(o_ref.dtype)


def prepare_params(params, *, compute_dtype=jnp.bfloat16):
    """Pad hidden/output feature dims to multiples of 128 (exact, zero
    padding), cast weights to the MXU compute dtype, and fold the three biases
    into one lane-aligned f32 operand.  The input dim of w1 is left unpadded.

    Biases may be PyTorch-style 1-D or (1, N); both are accepted."""
    w1, b1 = params["w1"], params["b1"]
    w2, b2 = params["w2"], params["b2"]
    w3, b3 = params["w3"], params["b3"]
    b1 = jnp.asarray(b1).reshape(1, -1)
    b2 = jnp.asarray(b2).reshape(1, -1)
    b3 = jnp.asarray(b3).reshape(1, -1)

    din, hb = w1.shape
    ht = w2.shape[1]
    dout = w3.shape[1]
    hb_p = _round_up(hb, 128)
    ht_p = _round_up(ht, 128)
    dout_p = _round_up(dout, 128)
    # Note (v6e/v7x): if real hidden/output widths are >=256, keep any future
    # N-side tiling at multiples of 256 (MXUs are 256-wide on those chips).

    def pad_cols(a, cols):
        return jnp.pad(a, ((0, 0), (0, cols - a.shape[1])))

    def pad2(a, rows, cols):
        return jnp.pad(a, ((0, rows - a.shape[0]), (0, cols - a.shape[1])))

    return {
        "w1": pad_cols(w1, hb_p).astype(compute_dtype),          # (din, hb_p)
        "w2": pad2(w2, hb_p, ht_p).astype(compute_dtype),        # (hb_p, ht_p)
        "w3": pad2(w3, ht_p, dout_p).astype(compute_dtype),      # (ht_p, dout_p)
        "bcat": jnp.concatenate(
            [pad_cols(b1, hb_p), pad_cols(b2, ht_p), pad_cols(b3, dout_p)],
            axis=1).astype(jnp.float32),
        "dims": dict(din=din, hb=hb, ht=ht, dout=dout,
                     hb_p=hb_p, ht_p=ht_p, dout_p=dout_p),
    }


def dynamic_cognitive_core_forward(x, prepared, *, block_b=512,
                                   out_dtype=jnp.float32,
                                   return_padded=False,
                                   vmem_budget_bytes=40 * 1024 * 1024):
    """Fused 3-layer MLP forward pass in a single Pallas kernel.

    x:        [B, input_size] float32
    prepared: output of prepare_params(params)
    out_dtype / return_padded: set to jnp.bfloat16 / True to further cut
        output-side HBM traffic when the consumer can take a padded slab.
    """
    d = prepared["dims"]
    din, dout = d["din"], d["dout"]
    hb_p, ht_p, dout_p = d["hb_p"], d["ht_p"], d["dout_p"]
    w1, w2, w3, bcat = (prepared["w1"], prepared["w2"], prepared["w3"],
                        prepared["bcat"])

    B = x.shape[0]
    out_itemsize = jnp.dtype(out_dtype).itemsize
    x_itemsize = x.dtype.itemsize
    weight_bytes = ((w1.size + w2.size + w3.size) * w1.dtype.itemsize
                    + bcat.size * 4)

    def tile_vmem_bytes(tb):
        # double-buffered x/out tiles + f32 intermediates (h1, h2) +
        # double-buffered resident weights (conservative).
        return (2 * tb * din * x_itemsize
                + 2 * tb * dout_p * out_itemsize
                + tb * (hb_p + ht_p) * 4
                + 2 * weight_bytes)

    # Batch tile: start large (amortize ~0.35 us per grid step), shrink until
    # the estimated footprint fits the VMEM budget (v7x: 64 MiB physical).
    if B >= block_b:
        tb = block_b
    else:
        tb = _round_up(max(B, 16), 16)   # 16 = bf16 sublane packing
    while tb > 64 and tile_vmem_bytes(tb) > vmem_budget_bytes:
        tb //= 2
    b_pad = _round_up(B, tb)

    # Skip the pad pass entirely when the batch already tiles evenly.
    xp = x if b_pad == B else jnp.pad(x, ((0, b_pad - B), (0, 0)))

    kernel = functools.partial(_mlp_kernel, hb=hb_p, ht=ht_p)

    flops = 2 * b_pad * (din * hb_p + hb_p * ht_p + ht_p * dout_p)
    bytes_accessed = (b_pad * din * x_itemsize + weight_bytes
                      + b_pad * dout_p * out_itemsize)

    est_vmem = tile_vmem_bytes(tb)
    compiler_kwargs = dict(dimension_semantics=("parallel",))
    if est_vmem > 12 * 1024 * 1024:
        # v5e's scoped-VMEM default is only 16 MiB; raise the limit (with
        # headroom) when big tiles / big weights need it.  No-op at demo sizes.
        compiler_kwargs["vmem_limit_bytes"] = min(
            int(est_vmem * 1.3), vmem_budget_bytes + 8 * 1024 * 1024)

    out = pl.pallas_call(
        kernel,
        out_shape=jax.ShapeDtypeStruct((b_pad, dout_p), out_dtype),
        grid=(b_pad // tb,),
        in_specs=[
            pl.BlockSpec((tb, din), lambda i: (i, 0)),        # x: swept, K unpadded
            pl.BlockSpec((din, hb_p), lambda i: (0, 0)),      # w1: resident
            pl.BlockSpec((hb_p, ht_p), lambda i: (0, 0)),     # w2: resident
            pl.BlockSpec((ht_p, dout_p), lambda i: (0, 0)),   # w3: resident
            pl.BlockSpec((1, hb_p + ht_p + dout_p), lambda i: (0, 0)),  # biases
        ],
        out_specs=pl.BlockSpec((tb, dout_p), lambda i: (i, 0)),
        compiler_params=pltpu.CompilerParams(**compiler_kwargs),
        cost_estimate=pl.CostEstimate(flops=flops, transcendentals=0,
                                      bytes_accessed=bytes_accessed),
    )(xp, w1, w2, w3, bcat)

    if return_padded:
        return out
    return out[:B, :dout]


def init_params(key, input_size, base_hidden_size, total_hidden_size, output_size):
    """Deterministic init matching nn.Linear shapes (stored as [in, out])."""
    ks = jax.random.split(key, 6)
    bound1 = 1.0 / jnp.sqrt(input_size)
    bound2 = 1.0 / jnp.sqrt(base_hidden_size)
    bound3 = 1.0 / jnp.sqrt(total_hidden_size)
    return {
        "w1": jax.random.uniform(ks[0], (input_size, base_hidden_size),
                                 jnp.float32, -bound1, bound1),
        "b1": jax.random.uniform(ks[1], (base_hidden_size,),
                                 jnp.float32, -bound1, bound1),
        "w2": jax.random.uniform(ks[2], (base_hidden_size, total_hidden_size),
                                 jnp.float32, -bound2, bound2),
        "b2": jax.random.uniform(ks[3], (total_hidden_size,),
                                 jnp.float32, -bound2, bound2),
        "w3": jax.random.uniform(ks[4], (total_hidden_size, output_size),
                                 jnp.float32, -bound3, bound3),
        "b3": jax.random.uniform(ks[5], (output_size,),
                                 jnp.float32, -bound3, bound3),
    }


def reference_forward(x, p):
    h1 = jnp.maximum(x @ p["w1"] + p["b1"][None, :], 0.0)
    h2 = jnp.maximum(h1 @ p["w2"] + p["b2"][None, :], 0.0)
    return h2 @ p["w3"] + p["b3"][None, :]


if __name__ == "__main__":
    input_size, base_hidden, total_hidden, output_size = 32, 64, 128, 16
    batch = 8

    key = jax.random.PRNGKey(0)
    kx, kp = jax.random.split(key)
    x = jax.random.normal(kx, (batch, input_size), dtype=jnp.float32)
    params = init_params(kp, input_size, base_hidden, total_hidden, output_size)
    prepared = prepare_params(params)

    out = dynamic_cognitive_core_forward(x, prepared)
    out = jax.block_until_ready(out)

    ref = reference_forward(x, params)
    assert out.shape == (batch, output_size)
    # bf16 MXU inputs with f32 accumulation: loosened tolerance vs f32 reference.
    assert jnp.allclose(out, ref, atol=2e-2, rtol=2e-2), "mismatch vs JAX reference"

    print("KERNEL_OK")
</pallas_src>

<mosaic_0001>
module attributes {stable_mosaic.version = 11 : i64} {
  func.func @_mlp_kernel(%arg0: i32, %arg1: memref<16x32xf32, #tpu.memory_space<vmem>>, %arg2: memref<32x128xbf16, #tpu.memory_space<vmem>>, %arg3: memref<128x128xbf16, #tpu.memory_space<vmem>>, %arg4: memref<128x128xbf16, #tpu.memory_space<vmem>>, %arg5: memref<1x384xf32, #tpu.memory_space<vmem>>, %arg6: memref<16x128xf32, #tpu.memory_space<vmem>>) attributes {dimension_semantics = [#tpu.dimension_semantics<parallel>], iteration_bounds = array<i64: 1>, scalar_prefetch = 0 : i64, scratch_operands = 0 : i64, tpu.core_type = #tpu.core_type<tc>, window_params = [{transform_indices = @transform_0, window_bounds = array<i64: 16, 32>}, {pipeline_mode = #tpu.pipeline_mode<synchronous>, transform_indices = @transform_1, window_bounds = array<i64: 32, 128>}, {pipeline_mode = #tpu.pipeline_mode<synchronous>, transform_indices = @transform_2, window_bounds = array<i64: 128, 128>}, {pipeline_mode = #tpu.pipeline_mode<synchronous>, transform_indices = @transform_3, window_bounds = array<i64: 128, 128>}, {pipeline_mode = #tpu.pipeline_mode<synchronous>, transform_indices = @transform_4, window_bounds = array<i64: 1, 384>}, {transform_indices = @transform_5, window_bounds = array<i64: 16, 128>}]} {
    %c0 = arith.constant 0 : index
    %c0_0 = arith.constant 0 : index
    %0 = vector.load %arg1[%c0, %c0_0] : memref<16x32xf32, #tpu.memory_space<vmem>>, vector<16x32xf32>
    %1 = arith.truncf %0 : vector<16x32xf32> to vector<16x32xbf16>
    %c0_1 = arith.constant 0 : index
    %c0_2 = arith.constant 0 : index
    %2 = vector.load %arg2[%c0_1, %c0_2] : memref<32x128xbf16, #tpu.memory_space<vmem>>, vector<32x128xbf16>
    %cst = arith.constant dense<0.000000e+00> : vector<16x128xf32>
    %3 = tpu.matmul %1, %2, %cst {dimension_numbers = #tpu.dot_dimension_numbers<[1], [0], [0], [1], [0, 0, 1, 1], [], []>} : vector<16x32xbf16>, vector<32x128xbf16>, vector<16x128xf32> -> vector<16x128xf32>
    %c0_3 = arith.constant 0 : index
    %c0_4 = arith.constant 0 : index
    %4 = vector.load %arg5[%c0_3, %c0_4] : memref<1x384xf32, #tpu.memory_space<vmem>>, vector<1x128xf32>
    %5 = vector.broadcast %4 : vector<1x128xf32> to vector<16x128xf32>
    %6 = arith.addf %3, %5 : vector<16x128xf32>
    %cst_5 = arith.constant 0.000000e+00 : f32
    %7 = vector.broadcast %cst_5 : f32 to vector<16x128xf32>
    %8 = arith.maximumf %6, %7 : vector<16x128xf32>
    %9 = arith.truncf %8 : vector<16x128xf32> to vector<16x128xbf16>
    %c0_6 = arith.constant 0 : index
    %c0_7 = arith.constant 0 : index
    %10 = vector.load %arg3[%c0_6, %c0_7] : memref<128x128xbf16, #tpu.memory_space<vmem>>, vector<128x128xbf16>
    %cst_8 = arith.constant dense<0.000000e+00> : vector<16x128xf32>
    %11 = tpu.matmul %9, %10, %cst_8 {dimension_numbers = #tpu.dot_dimension_numbers<[1], [0], [0], [1], [0, 0, 1, 1], [], []>} : vector<16x128xbf16>, vector<128x128xbf16>, vector<16x128xf32> -> vector<16x128xf32>
    %c0_9 = arith.constant 0 : index
    %c128 = arith.constant 128 : index
    %12 = vector.load %arg5[%c0_9, %c128] : memref<1x384xf32, #tpu.memory_space<vmem>>, vector<1x128xf32>
    %13 = vector.broadcast %12 : vector<1x128xf32> to vector<16x128xf32>
    %14 = arith.addf %11, %13 : vector<16x128xf32>
    %cst_10 = arith.constant 0.000000e+00 : f32
    %15 = vector.broadcast %cst_10 : f32 to vector<16x128xf32>
    %16 = arith.maximumf %14, %15 : vector<16x128xf32>
    %17 = arith.truncf %16 : vector<16x128xf32> to vector<16x128xbf16>
    %c0_11 = arith.constant 0 : index
    %c0_12 = arith.constant 0 : index
    %18 = vector.load %arg4[%c0_11, %c0_12] : memref<128x128xbf16, #tpu.memory_space<vmem>>, vector<128x128xbf16>
    %cst_13 = arith.constant dense<0.000000e+00> : vector<16x128xf32>
    %19 = tpu.matmul %17, %18, %cst_13 {dimension_numbers = #tpu.dot_dimension_numbers<[1], [0], [0], [1], [0, 0, 1, 1], [], []>} : vector<16x128xbf16>, vector<128x128xbf16>, vector<16x128xf32> -> vector<16x128xf32>
    %c0_14 = arith.constant 0 : index
    %c256 = arith.constant 256 : index
    %20 = vector.load %arg5[%c0_14, %c256] : memref<1x384xf32, #tpu.memory_space<vmem>>, vector<1x128xf32>
    %21 = vector.broadcast %20 : vector<1x128xf32> to vector<16x128xf32>
    %22 = arith.addf %19, %21 : vector<16x128xf32>
    %c0_15 = arith.constant 0 : index
    %c0_16 = arith.constant 0 : index
    %23 = vector.load %arg6[%c0_15, %c0_16] : memref<16x128xf32, #tpu.memory_space<vmem>>, vector<16x128xf32>
    tpu.vector_store %arg6[%c0_15, %c0_16], %22 {strides = array<i32>} : memref<16x128xf32, #tpu.memory_space<vmem>>, vector<16x128xf32>,
    return
  }
  func.func @transform_0(%arg0: i32) -> (i32, i32) {
    %c0_i32 = arith.constant 0 : i32
    %c0_i32_0 = arith.constant 0 : i32
    return %arg0, %c0_i32 : i32, i32
  }
  func.func @transform_1(%arg0: i32) -> (i32, i32) {
    %c0_i32 = arith.constant 0 : i32
    %c0_i32_0 = arith.constant 0 : i32
    %c0_i32_1 = arith.constant 0 : i32
    return %c0_i32, %c0_i32_0 : i32, i32
  }
  func.func @transform_2(%arg0: i32) -> (i32, i32) {
    %c0_i32 = arith.constant 0 : i32
    %c0_i32_0 = arith.constant 0 : i32
    %c0_i32_1 = arith.constant 0 : i32
    return %c0_i32, %c0_i32_0 : i32, i32
  }
  func.func @transform_3(%arg0: i32) -> (i32, i32) {
    %c0_i32 = arith.constant 0 : i32
    %c0_i32_0 = arith.constant 0 : i32
    %c0_i32_1 = arith.constant 0 : i32
    return %c0_i32, %c0_i32_0 : i32, i32
  }
  func.func @transform_4(%arg0: i32) -> (i32, i32) {
    %c0_i32 = arith.constant 0 : i32
    %c0_i32_0 = arith.constant 0 : i32
    %c0_i32_1 = arith.constant 0 : i32
    return %c0_i32, %c0_i32_0 : i32, i32
  }
  func.func @transform_5(%arg0: i32) -> (i32, i32) {
    %c0_i32 = arith.constant 0 : i32
    %c0_i32_0 = arith.constant 0 : i32
    return %arg0, %c0_i32 : i32, i32
  }
}

</mosaic_0001>

<bundles_post_ra>
// kernel: tpu_custom_call.1
= control target key start
LH: loop header
LB: loop body
LE: loop exit
PB: predicated region body
PF: predicated region fallthrough
CT: control target
= control target key end

     0   :  { %10 = vsyncpa [#allocation3], 0  ;;  %s793_s0 = inlined_call_operand.hbm [shape: f32[16,32], index: 0, kind: input, shape index: {}]   ;;  %s794_s1 = inlined_call_operand.hbm [shape: bf16[32,128], index: 1, kind: input, shape index: {}]   ;;  %s795_s2 = inlined_call_operand.hbm [shape: bf16[128,128], index: 2, kind: input, shape index: {}]   ;;  %s796_s3 = inlined_call_operand.hbm [shape: bf16[128,128], index: 3, kind: input, shape index: {}]   ;;  %s797_s4 = inlined_call_operand.vmem [shape: f32[1,384], index: 4, kind: input, shape index: {}]   ;;  %s798_s5 = inlined_call_operand.hbm [shape: f32[16,128], index: 5, kind: output, shape index: {}]  }
   0x1   :  { %11 = vsyncpa [#allocation6], 0 }
   0x2   :  { %12 = vsyncpa [#allocation9], 0 }
   0x3   :  { %13 = vsyncpa [#allocation4], 0  ;;  %s637_s18 = smov [#allocation5]   ;;  %s519_s22 = scalar_lea.hbm %s794_s1, 256 }
   0x4   :  { %s31_s19 = sshll.u32 %s637_s18, 4  ;;  %p520_p0 = scmp.ne.s32.totalorder %s794_s1, %s519_s22  ;;  %s32_s19 = int_to_ptr.vmem [resolvable:$true] %s31_s19 }
   0x5   :  { %p523_p1 = scmp.lt.u32.totalorder %s519_s22, %s794_s1 }
   0x7   :  { %p525_p2 = pnand %p523_p1, %p520_p0 }
   0x9   :  { %528 = shalt.err (!%p525_p2)
}
   0xa   :  { %s529_s27 = scalar_lea.vmem %s32_s19, 256  ;;  %p534_p4 = scmp.lt.s32.totalorder %s32_s19, %s32_s19 }
   0xb   :  { %p530_p3 = scmp.ne.s32.totalorder %s32_s19, %s529_s27  ;;  %p535_p5 = scmp.lt.s32.totalorder %s529_s27, %s529_s27 }
   0xd   :  { %p536_p6 = por %p535_p5, %p534_p4 }
   0xf   :  { %p537_p7 = pnand %p536_p6, %p530_p3 }
  0x11   :  { %540 = shalt.err (!%p537_p7)
}
  0x12   :  { %s638_s28 = smov 64   ;;  %s639_s29 = smov 4  }
  0x13   :  { %37 = dma.hbm_to_vmem [thread:$0]  %s794_s1, 256, %s32_s19, [#allocation6], %s638_s28, %s638_s28, %s639_s29  }
  0x14   :  { %s640_s7 = smov [#allocation2]   ;;  %s541_s11 = scalar_lea.hbm %s793_s0, 256 }
  0x15   :  { %s19_s8 = sshll.u32 %s640_s7, 4  ;;  %p542_p8 = scmp.ne.s32.totalorder %s793_s0, %s541_s11  ;;  %s20_s8 = int_to_ptr.vmem [resolvable:$true] %s19_s8 }
  0x16   :  { %p545_p9 = scmp.lt.u32.totalorder %s541_s11, %s793_s0 }
  0x18   :  { %p547_p10 = pnand %p545_p9, %p542_p8 }
  0x1a   :  { %550 = shalt.err (!%p547_p10)
}
  0x1b   :  { %s551_s16 = scalar_lea.vmem %s20_s8, 256  ;;  %p556_p12 = scmp.lt.s32.totalorder %s20_s8, %s20_s8 }
  0x1c   :  { %p552_p11 = scmp.ne.s32.totalorder %s20_s8, %s551_s16  ;;  %p557_p13 = scmp.lt.s32.totalorder %s551_s16, %s551_s16 }
  0x1e   :  { %p558_p0 = por %p557_p13, %p556_p12 }
  0x20   :  { %p559_p1 = pnand %p558_p0, %p552_p11 }
  0x22   :  { %562 = shalt.err (!%p559_p1)
}
  0x23   :  { %s641_s1 = smov 128   ;;  %s642_s17 = smov 8  }
  0x24   :  { %25 = dma.hbm_to_vmem [thread:$0]  %s793_s0, 256, %s20_s8, [#allocation3], %s641_s1, %s641_s1, %s642_s17  }
  0x25   :  { %s643_s20 = smov [#allocation7]   ;;  %s644_s22 = smov [#allocation8]  }
  0x26   :  { %s43_s21 = sshll.u32 %s643_s20, 4  ;;  %s55_s23 = sshll.u32 %s644_s22, 4  ;;  %s44_s21 = int_to_ptr.vmem [resolvable:$true] %s43_s21  ;;  %s708_s23 = int_to_ptr.vmem [resolvable:$true] %s55_s23 }
  0x27   :  { %s563_s26 = scalar_lea.hbm %s795_s2, 1024 }
  0x28   :  { %p564_p2 = scmp.ne.s32.totalorder %s795_s2, %s563_s26  ;;  %p567_p3 = scmp.lt.u32.totalorder %s563_s26, %s795_s2 }
  0x2a   :  { %p569_p4 = pnand %p567_p3, %p564_p2 }
  0x2c   :  { %572 = shalt.err (!%p569_p4)
}
  0x2d   :  { %s573_s0 = scalar_lea.vmem %s44_s21, 1024  ;;  %p578_p6 = scmp.lt.s32.totalorder %s44_s21, %s44_s21 }
  0x2e   :  { %p574_p5 = scmp.ne.s32.totalorder %s44_s21, %s573_s0  ;;  %p579_p7 = scmp.lt.s32.totalorder %s573_s0, %s573_s0 }
  0x30   :  { %p580_p8 = por %p579_p7, %p578_p6 }
  0x32   :  { %p581_p9 = pnand %p580_p8, %p574_p5 }
  0x34   :  { %584 = shalt.err (!%p581_p9)
}
  0x35   :  { %49 = dma.hbm_to_vmem [thread:$0]  %s795_s2, 1024, %s44_s21, [#allocation6], %s638_s28, %s638_s28, %s639_s29  }
  0x36   :  { %s585_s12 = scalar_lea.hbm %s796_s3, 1024 }
  0x37   :  { %p586_p10 = scmp.ne.s32.totalorder %s796_s3, %s585_s12  ;;  %p589_p11 = scmp.lt.u32.totalorder %s585_s12, %s796_s3 }
  0x39   :  { %p591_p12 = pnand %p589_p11, %p586_p10 }
  0x3b   :  { %594 = shalt.err (!%p591_p12)
}
  0x3c   :  { %s595_s18 = scalar_lea.vmem %s708_s23, 1024  ;;  %p600_p0 = scmp.lt.s32.totalorder %s708_s23, %s708_s23 }
  0x3d   :  { %p596_p13 = scmp.ne.s32.totalorder %s708_s23, %s595_s18  ;;  %p601_p1 = scmp.lt.s32.totalorder %s595_s18, %s595_s18 }
  0x3f   :  { %p602_p2 = por %p601_p1, %p600_p0 }
  0x41   :  { %p603_p3 = pnand %p602_p2, %p596_p13 }
  0x43   :  { %606 = shalt.err (!%p603_p3)
}
  0x44   :  { %61 = dma.hbm_to_vmem [thread:$0]  %s796_s3, 1024, %s708_s23, [#allocation9], %s638_s28, %s638_s28, %s639_s29  }
  0x45   :  { %629 = dma.done.wait [#allocation3], 256  }
  0x46   :  { %630 = vsyncadd [#allocation3], 4294967040 }
  0x47   :  { %631 = dma.done.wait [#allocation6], 1280  }
  0x48   :  { %632 = vsyncadd [#allocation6], 4294966016 }
  0x49   :  { %633 = dma.done.wait [#allocation9], 1024  }
  0x4a   :  { %634 = vsyncadd [#allocation9], 4294966272  ;;  %v645_v0 = vmov 0.0   ;;  %vm646_vm0 = vmmov 0   ;;  %v501_v1 = vld [vmem:[#allocation5] sm:$0xff]   ;;  %v502_v2 = vld [vmem:[#allocation5 + $0x8] sm:$0xff]  }
  0x4b   :  { %442 = vmatprep.subr.bf16.mxu0 %v645_v0  ;;  %446 = vmatprep.mubr.msk.bf16.mxu0 %vm646_vm0, %v645_v0  ;;  %v77_v3 = vld [vmem:[#allocation2] sm:$0xff]  ;;  %v78_v4 = vld [vmem:[#allocation2 + $0x8] sm:$0xff]  ;;  %vm103_vm1 = vcmask 261120   ;;  %v505_v8 = vld [vmem:[#allocation7 + $0x10] sm:$0xff]   ;;  %s647_s23 = smov [#allocation10]  }
  0x4c   :  { %450 = vmatprep.subr.bf16.mxu1 %v645_v0  ;;  %466 = vmatprep.mubr.msk.bf16.mxu1 %vm646_vm0, %v645_v0  ;;  %v503_v5 = vld [vmem:[#allocation7] sm:$0xff]   ;;  %v79_v6 = vpack.c.bf16 %v78_v4, %v77_v3  ;;  %v504_v7 = vld [vmem:[#allocation7 + $0x8] sm:$0xff]   ;;  %v506_v9 = vld [vmem:[#allocation7 + $0x18] sm:$0xff]   ;;  %s385_s24 = sshll.u32 %s647_s23, 4  ;;  %s386_s24 = int_to_ptr.vmem [resolvable:$true] %s385_s24 }
  0x4d   :  { %443 = vmatpush3.bf16.msra.mxu0 %v501_v1  ;;  %451 = vmatpush3.bf16.msra.mxu1 %v503_v5  ;;  %v507_v10 = vld [vmem:[#allocation7 + $0x20] sm:$0xff]   ;;  %v508_v11 = vld [vmem:[#allocation7 + $0x28] sm:$0xff]   ;;  %v509_v12 = vld [vmem:[#allocation7 + $0x30] sm:$0xff]   ;;  %s607_s25 = scalar_lea.vmem %s386_s24, 256  ;;  %p612_p5 = scmp.lt.s32.totalorder %s386_s24, %s386_s24 }
  0x4e   :  { %444 = vmatprep.subr.bf16.mxu0 %v645_v0  ;;  %452 = vmatprep.subr.bf16.mxu1 %v645_v0  ;;  %v510_v13 = vld [vmem:[#allocation7 + $0x38] sm:$0xff]   ;;  %v511_v14 = vld [vmem:[#allocation8] sm:$0xff]   ;;  %v512_v15 = vld [vmem:[#allocation8 + $0x8] sm:$0xff]   ;;  %p608_p4 = scmp.ne.s32.totalorder %s386_s24, %s607_s25  ;;  %p613_p6 = scmp.lt.s32.totalorder %s607_s25, %s607_s25 }
  0x4f   :  { %v513_v16 = vld [vmem:[#allocation8 + $0x10] sm:$0xff]   ;;  %v514_v17 = vld [vmem:[#allocation8 + $0x18] sm:$0xff]   ;;  %v515_v18 = vld [vmem:[#allocation8 + $0x20] sm:$0xff]  }
  0x50   :  { %v516_v19 = vld [vmem:[#allocation8 + $0x28] sm:$0xff]   ;;  %v399_v20 = vld [vmem:[%s797_s4] ss:$0 sm:$0xff]  ;;  %v517_v30 = vld [vmem:[#allocation8 + $0x30] sm:$0xff]   ;;  %p614_p7 = por %p613_p6, %p612_p5 }
  0x51   :  { %445 = vmatpush3.bf16.msra.mxu0 %v502_v2  ;;  %453 = vmatpush3.bf16.msra.mxu1 %v504_v7  ;;  %v518_v31 = vld [vmem:[#allocation8 + $0x38] sm:$0xff]   ;;  %v403_v32 = vld [vmem:[%s797_s4 + $0x1] ss:$0 sm:$0xff]  ;;  %v412_v42 = vld [vmem:[%s797_s4 + $0x2] ss:$0 sm:$0xff] }
  0x52   :  { %470 = vmatprep.subr.bf16.mxu0 %v645_v0  ;;  %454 = vmatprep.subr.bf16.mxu1 %v645_v0  ;;  %p615_p8 = pnand %p614_p7, %p608_p4 }
  0x54   :  { %447 = vmatmul.mubr.msk.bf16.vlgmr.msra.gmra.mrb[0].mxu0 %vm103_vm1, %v79_v6 }
  0x55   :  { %486 = vmatprep.mubr.msk.bf16.mxu0 %vm646_vm0, %v645_v0  ;;  %455 = vmatpush3.bf16.msra.mxu1 %v505_v8 }
  0x56   :  { %456 = vmatprep.subr.bf16.mxu1 %v645_v0  ;;  %471 = vmatpush3.bf16.msra.mxu0 %v511_v14 }
  0x57   :  { %472 = vmatprep.subr.bf16.mxu0 %v645_v0 }
  0x59   :  { %457 = vmatpush3.bf16.msra.mxu1 %v506_v9 }
  0x5a   :  { %458 = vmatprep.subr.bf16.mxu1 %v645_v0  ;;  %473 = vmatpush3.bf16.msra.mxu0 %v512_v15 }
  0x5b   :  { %474 = vmatprep.subr.bf16.mxu0 %v645_v0 }
  0x5d   :  { %459 = vmatpush3.bf16.msra.mxu1 %v507_v10 }
  0x5e   :  { %460 = vmatprep.subr.bf16.mxu1 %v645_v0  ;;  %475 = vmatpush3.bf16.msra.mxu0 %v513_v16 }
  0x5f   :  { %476 = vmatprep.subr.bf16.mxu0 %v645_v0 }
  0x61   :  { %461 = vmatpush3.bf16.msra.mxu1 %v508_v11 }
  0x62   :  { %462 = vmatprep.subr.bf16.mxu1 %v645_v0  ;;  %477 = vmatpush3.bf16.msra.mxu0 %v514_v17 }
  0x63   :  { %478 = vmatprep.subr.bf16.mxu0 %v645_v0 }
  0x65   :  { %463 = vmatpush3.bf16.msra.mxu1 %v509_v12 }
  0x66   :  { %464 = vmatprep.subr.bf16.mxu1 %v645_v0  ;;  %479 = vmatpush3.bf16.msra.mxu0 %v515_v18 }
  0x67   :  { %480 = vmatprep.subr.bf16.mxu0 %v645_v0 }
  0x69   :  { %465 = vmatpush3.bf16.msra.mxu1 %v510_v13 }
  0x6a   :  { %481 = vmatpush3.bf16.msra.mxu0 %v516_v19 }
  0x6b   :  { %482 = vmatprep.subr.bf16.mxu0 %v645_v0 }
  0x6e   :  { %483 = vmatpush3.bf16.msra.mxu0 %v517_v30 }
  0x6f   :  { %484 = vmatprep.subr.bf16.mxu0 %v645_v0 }
  0x72   :  { %485 = vmatpush3.bf16.msra.mxu0 %v518_v31 }
 0x127   :  { %v141_v21 = vpop.f32.mrb[0].mxu0 }
 0x128   :  { %v142_v22 = vadd.f32 %v399_v20, %v141_v21  ;;  %v448_v23 = vpop.f32.mrb[1].mxu0 }
 0x129   :  { %v144_v24 = vpop.f32.mrb[2].mxu0 }
 0x12a   :  { %v145_v25 = vadd.f32 %v399_v20, %v144_v24  ;;  %v449_v26 = vpop.f32.mrb[3].mxu0  ;;  %v148_v27 = vmax.f32 %v142_v22, 0.0 }
 0x12c   :  { %v149_v28 = vmax.f32 %v145_v25, 0.0 }
 0x12e   :  { %v150_v29 = vpack.c.bf16 %v149_v28, %v148_v27 }
 0x130   :  { %467 = vmatmul.mubr.bf16.vlgmr.msra.gmra.mrb[0].mxu1 %v150_v29 }
 0x203   :  { %v256_v33 = vpop.f32.mrb[0].mxu1 }
 0x204   :  { %v257_v34 = vadd.f32 %v403_v32, %v256_v33  ;;  %v468_v35 = vpop.f32.mrb[1].mxu1 }
 0x205   :  { %v259_v36 = vpop.f32.mrb[2].mxu1 }
 0x206   :  { %v260_v37 = vadd.f32 %v403_v32, %v259_v36  ;;  %v469_v38 = vpop.f32.mrb[3].mxu1  ;;  %v263_v39 = vmax.f32 %v257_v34, 0.0 }
 0x208   :  { %v264_v40 = vmax.f32 %v260_v37, 0.0 }
 0x20a   :  { %v265_v41 = vpack.c.bf16 %v264_v40, %v263_v39 }
 0x20c   :  { %487 = vmatmul.mubr.bf16.vlgmr.msra.gmra.mrb[4].mxu0 %v265_v41 }
 0x2df   :  { %v371_v43 = vpop.f32.mrb[4].mxu0 }
 0x2e0   :  { %v372_v44 = vadd.f32 %v412_v42, %v371_v43  ;;  %v488_v45 = vpop.f32.mrb[5].mxu0 }
 0x2e1   :  { %v374_v46 = vpop.f32.mrb[6].mxu0 }
 0x2e2   :  { %378 = vst [vmem:[#allocation10] sm:$0xff] %v372_v44  ;;  %v375_v47 = vadd.f32 %v412_v42, %v374_v46  ;;  %v489_v48 = vpop.f32.mrb[7].mxu0 }
 0x2e4   :  { %379 = vst [vmem:[#allocation10 + $0x8] sm:$0xff] %v375_v47 }
 0x2e5   :  { %618 = shalt.err (!%p615_p8)
}
 0x2e6   :  { %s619_s27 = scalar_lea.hbm %s798_s5, 256 }
 0x2e7   :  { %p620_p9 = scmp.ne.s32.totalorder %s798_s5, %s619_s27  ;;  %p623_p10 = scmp.lt.u32.totalorder %s619_s27, %s798_s5 }
 0x2e9   :  { %p625_p11 = pnand %p623_p10, %p620_p9 }
 0x2eb   :  { %628 = shalt.err (!%p625_p11)
}
 0x2ec   :  { %391 = dma.vmem_to_hbm [thread:$0]  %s386_s24, 256, %s798_s5, [#allocation4], %s641_s1, %s641_s1, %s642_s17  }
 0x2ed   :  { %635 = dma.done.wait [#allocation4], 256  }
 0x2ee   :  { %636 = vsyncadd [#allocation4], 4294967040 }
 0x2ef   :  { %395 = vsyncpa [#allocation3], 1 }
 0x2f0   :  { %396 = vsyncpa [#allocation6], 1 }
 0x2f1   :  { %397 = vsyncpa [#allocation9], 1 }
 0x2f2   :  { %398 = vsyncpa [#allocation4], 1 }

</bundles_post_ra>
